<compile_context>
chip_gen: v7x
topology: tpu7x:2x2x1
jax: 0.10.0
libtpu: 0.0.40
codegen_flags: <defaults>
</compile_context>

<pallas_src>
import functools
import math

import jax
import jax.numpy as jnp
import numpy as np
from jax.experimental import pallas as pl
from jax.experimental.pallas import tpu as pltpu


# ----------------------------------------------------------------------------
# Small helpers (tile picking, VMEM limit per chip generation).
# ----------------------------------------------------------------------------
def _round_up(x, m):
    return ((x + m - 1) // m) * m


def _pick_row_tile(n, target):
    """Largest multiple-of-8 divisor of n that is <= target (or n itself)."""
    if n <= target:
        return n
    t = (target // 8) * 8
    while t >= 8 and n % t:
        t -= 8
    return t if (t >= 8 and n % t == 0) else n


def _pick_k_tile(d, target):
    """Largest multiple-of-128 divisor of d that is <= target (or d itself)."""
    if d <= target:
        return d
    t = (target // 128) * 128
    while t >= 128 and d % t:
        t -= 128
    return t if (t >= 128 and d % t == 0) else d


def _vmem_limit_bytes():
    # ~70% of physical VMEM: ~90 MiB on 128 MiB parts (v5e/v6e), ~45 MiB on v7x (64 MiB).
    try:
        cap = pltpu.get_tpu_info().vmem_capacity_bytes
        return int(min(max(cap * 0.7, 32 * 1024 * 1024), 100 * 1024 * 1024))
    except Exception:
        return 48 * 1024 * 1024


# ----------------------------------------------------------------------------
# Kernel 1: fused QKV projection with three separate outputs.
# x:(tn, D) bf16 @ w:(D, 3D) bf16 (weight block index constant -> DMA'd once,
# stays resident) -> f32 accumulate + bias -> Q/K/V tiles written directly.
# ----------------------------------------------------------------------------
def qkv_kernel(x_ref, w_ref, b_ref, q_ref, k_ref, v_ref):
    acc = jnp.dot(x_ref[...], w_ref[...], preferred_element_type=jnp.float32)
    acc = acc + b_ref[...]
    d = q_ref.shape[-1]
    q_ref[...] = acc[:, :d].astype(q_ref.dtype)
    k_ref[...] = acc[:, d:2 * d].astype(k_ref.dtype)
    v_ref[...] = acc[:, 2 * d:].astype(v_ref.dtype)


def qkv_proj(x2d_bf16, w_qkv_bf16, b_qkv, *, tile_n=512,
             vmem_limit=48 * 1024 * 1024):
    N, D = x2d_bf16.shape
    D3 = w_qkv_bf16.shape[1]
    tn = _pick_row_tile(N, tile_n)
    grid = (N // tn,)
    out_sd = jax.ShapeDtypeStruct((N, D), jnp.bfloat16)
    cost = pl.CostEstimate(
        flops=2 * N * D * D3,
        transcendentals=0,
        bytes_accessed=2 * (N * D + D * D3 + N * D3) + 4 * D3)
    # TODO(synk): for very large D the resident (D, 3D) weight would itself need
    #             column/reduction tiling; at transformer-tag sizes it fits VMEM.
    return pl.pallas_call(
        qkv_kernel,
        out_shape=(out_sd, out_sd, out_sd),
        grid=grid,
        in_specs=[
            pl.BlockSpec((tn, D), lambda i: (i, 0)),
            pl.BlockSpec((D, D3), lambda i: (0, 0)),   # constant index -> streamed once
            pl.BlockSpec((1, D3), lambda i: (0, 0)),
        ],
        out_specs=(
            pl.BlockSpec((tn, D), lambda i: (i, 0)),
            pl.BlockSpec((tn, D), lambda i: (i, 0)),
            pl.BlockSpec((tn, D), lambda i: (i, 0)),
        ),
        compiler_params=pltpu.CompilerParams(
            dimension_semantics=("parallel",),
            vmem_limit_bytes=vmem_limit),
        cost_estimate=cost,
    )(x2d_bf16, w_qkv_bf16, b_qkv)


# ----------------------------------------------------------------------------
# Kernel 2: flash-style scaled dot-product attention (online softmax),
# q-axis tiled.  Grid: (BH/g "parallel", S/block_q "parallel", S/block_kv "arbitrary").
# ----------------------------------------------------------------------------
def flash_attn_kernel(q_ref, k_ref, v_ref, o_ref, m_sc, l_sc, acc_sc,
                      *, kv_valid, block_kv):
    kvi = pl.program_id(2)

    @pl.when(kvi == 0)
    def _init():
        m_sc[...] = jnp.full(m_sc.shape, -jnp.inf, m_sc.dtype)
        l_sc[...] = jnp.zeros(l_sc.shape, l_sc.dtype)
        acc_sc[...] = jnp.zeros(acc_sc.shape, acc_sc.dtype)

    q = q_ref[...]            # softmax scale already folded into the Q projection
    k = k_ref[...]
    v = v_ref[...]
    # Batched QK^T without an explicit transpose (contract last dims on the MXU).
    s = jnp.einsum("bqd,bkd->bqk", q, k, preferred_element_type=jnp.float32)
    if kv_valid is not None:  # static: mask only emitted when S was padded
        col = jax.lax.broadcasted_iota(jnp.int32, s.shape, 2) + kvi * block_kv
        s = jnp.where(col < kv_valid, s, -jnp.inf)

    m_prev = m_sc[...]
    m_new = jnp.maximum(m_prev, s.max(axis=-1, keepdims=True))
    alpha = jnp.exp(m_prev - m_new)
    p = jnp.exp(s - m_new)
    l_sc[...] = alpha * l_sc[...] + p.sum(axis=-1, keepdims=True)
    acc_sc[...] = alpha * acc_sc[...] + jnp.einsum(
        "bqk,bkd->bqd", p.astype(v.dtype), v, preferred_element_type=jnp.float32)
    m_sc[...] = m_new

    @pl.when(kvi == pl.num_programs(2) - 1)
    def _finalize():
        inv_l = pl.reciprocal(l_sc[...], approx=True)   # EUP slot, ~free
        o_ref[...] = (acc_sc[...] * inv_l).astype(o_ref.dtype)


def flash_attention(q, k, v, *, block_q=256, block_kv=256,
                    vmem_limit=48 * 1024 * 1024):
    BH, S, dh = q.shape
    # Pack a few pseudo-heads per grid step (amortizes per-step overhead) while
    # keeping the live (g, block_q, block_kv) f32 score tile bounded in VMEM.
    g = math.gcd(BH, min(8, max(1, 128 // dh)))
    bq = min(block_q, _round_up(S, 8))
    bkv = min(block_kv, _round_up(S, 8))
    s_q = _round_up(S, bq)
    s_kv = _round_up(S, bkv)
    if s_q != S:
        q = jnp.pad(q, ((0, 0), (0, s_q - S), (0, 0)))
    if s_kv != S:
        k = jnp.pad(k, ((0, 0), (0, s_kv - S), (0, 0)))
        v = jnp.pad(v, ((0, 0), (0, s_kv - S), (0, 0)))
    kv_valid = S if s_kv != S else None

    grid = (BH // g, s_q // bq, s_kv // bkv)
    cost = pl.CostEstimate(
        flops=4 * BH * s_q * s_kv * dh,
        transcendentals=BH * s_q * s_kv,
        bytes_accessed=2 * BH * (2 * s_q * dh + 2 * s_kv * dh))
    out = pl.pallas_call(
        functools.partial(flash_attn_kernel, kv_valid=kv_valid, block_kv=bkv),
        out_shape=jax.ShapeDtypeStruct((BH, s_q, dh), jnp.bfloat16),
        grid=grid,
        in_specs=[
            pl.BlockSpec((g, bq, dh), lambda b, i, j: (b, i, 0)),
            pl.BlockSpec((g, bkv, dh), lambda b, i, j: (b, j, 0)),
            pl.BlockSpec((g, bkv, dh), lambda b, i, j: (b, j, 0)),
        ],
        out_specs=pl.BlockSpec((g, bq, dh), lambda b, i, j: (b, i, 0)),
        scratch_shapes=[
            pltpu.VMEM((g, bq, 1), jnp.float32),     # running max
            pltpu.VMEM((g, bq, 1), jnp.float32),     # running denom
            pltpu.VMEM((g, bq, dh), jnp.float32),    # running accumulator
        ],
        compiler_params=pltpu.CompilerParams(
            dimension_semantics=("parallel", "parallel", "arbitrary"),
            vmem_limit_bytes=vmem_limit),
        cost_estimate=cost,
    )(q, k, v)
    if s_q != S:
        out = out[:, :S, :]
    return out


# ----------------------------------------------------------------------------
# Kernel 3: output projection (reduction-tiled) + residual + LayerNorm epilogue.
# Grid: (rows "parallel", D-reduction "arbitrary"); only a (tk, D) weight slice
# is ever resident; LN epilogue runs once per row tile under pl.when(last).
# ----------------------------------------------------------------------------
def out_ln_kernel(ctx_ref, wo_ref, bo_ref, x_ref, g_ref, b_ref, o_ref, acc_ref,
                  *, eps):
    ki = pl.program_id(1)

    @pl.when(ki == 0)
    def _init():
        acc_ref[...] = jnp.zeros(acc_ref.shape, acc_ref.dtype)

    acc_ref[...] += jnp.dot(ctx_ref[...], wo_ref[...],
                            preferred_element_type=jnp.float32)

    @pl.when(ki == pl.num_programs(1) - 1)
    def _finalize():
        # TODO(synk): dropout (p=0.0) would be applied to acc here with pltpu PRNG.
        y = acc_ref[...] + bo_ref[...] + x_ref[...]      # bias + residual, in f32
        mean = jnp.mean(y, axis=-1, keepdims=True)
        var = jnp.mean(jnp.square(y - mean), axis=-1, keepdims=True)
        yn = (y - mean) * jax.lax.rsqrt(var + eps)
        o_ref[...] = yn * g_ref[...] + b_ref[...]


def out_proj_residual_layernorm(ctx_bf16, wo_bf16, bo, x2d, gamma, beta,
                                *, eps=1e-5, tile_n=256, tile_k=512,
                                vmem_limit=48 * 1024 * 1024):
    N, D = ctx_bf16.shape
    tn = _pick_row_tile(N, tile_n)
    tk = _pick_k_tile(D, tile_k)
    grid = (N // tn, D // tk)
    cost = pl.CostEstimate(
        flops=2 * N * D * D,
        transcendentals=N,
        bytes_accessed=2 * N * D + 2 * D * D + 8 * N * D)
    return pl.pallas_call(
        functools.partial(out_ln_kernel, eps=eps),
        out_shape=jax.ShapeDtypeStruct((N, D), jnp.float32),
        grid=grid,
        in_specs=[
            pl.BlockSpec((tn, tk), lambda i, ki: (i, ki)),
            pl.BlockSpec((tk, D), lambda i, ki: (ki, 0)),
            pl.BlockSpec((1, D), lambda i, ki: (0, 0)),
            pl.BlockSpec((tn, D), lambda i, ki: (i, 0)),
            pl.BlockSpec((1, D), lambda i, ki: (0, 0)),
            pl.BlockSpec((1, D), lambda i, ki: (0, 0)),
        ],
        out_specs=pl.BlockSpec((tn, D), lambda i, ki: (i, 0)),
        scratch_shapes=[pltpu.VMEM((tn, D), jnp.float32)],
        compiler_params=pltpu.CompilerParams(
            dimension_semantics=("parallel", "arbitrary"),
            vmem_limit_bytes=vmem_limit),
        cost_estimate=cost,
    )(ctx_bf16, wo_bf16, bo, x2d, gamma, beta)


# ----------------------------------------------------------------------------
# One-time parameter prep (hoisted out of the forward pass).
# ----------------------------------------------------------------------------
def prepare_params(params, num_head):
    D = params["wq"].shape[0]
    dh = D // num_head
    scale = float(dh) ** (-0.5)
    # Fuse QKV into one (D, 3D) weight; fold the softmax scale into the Q columns.
    w_qkv = jnp.concatenate(
        [params["wq"] * scale, params["wk"], params["wv"]], axis=1)
    b_qkv = jnp.concatenate(
        [params["bq"] * scale, params["bk"], params["bv"]], axis=1)
    return {
        "w_qkv": w_qkv.astype(jnp.bfloat16),
        "b_qkv": b_qkv.astype(jnp.float32),
        "wo": params["wo"].astype(jnp.bfloat16),
        "bo": params["bo"],
        "gamma": params["gamma"],
        "beta": params["beta"],
    }


# ----------------------------------------------------------------------------
# Full module forward (glue reshapes in plain JAX, math in Pallas kernels).
# ----------------------------------------------------------------------------
def multi_head_attention_forward(x, prepared, num_head):
    B, S, D = x.shape
    dh = D // num_head
    N = B * S
    x2d = x.reshape(N, D)
    vmem_limit = _vmem_limit_bytes()

    q2d, k2d, v2d = qkv_proj(x2d.astype(jnp.bfloat16), prepared["w_qkv"],
                             prepared["b_qkv"], vmem_limit=vmem_limit)

    # Exact PyTorch semantics: Q.view(batch*num_head, -1, dim_head) -- a plain
    # row-major reshape with NO transpose (same free reshape here).
    Q = q2d.reshape(B * num_head, S, dh)
    K = k2d.reshape(B * num_head, S, dh)
    V = v2d.reshape(B * num_head, S, dh)

    ctx = flash_attention(Q, K, V, vmem_limit=vmem_limit)   # (BH, S, dh) bf16

    # context.view(batch, -1, dim_head * num_head)
    ctx2d = ctx.reshape(B, S, dh * num_head).reshape(N, D)

    out2d = out_proj_residual_layernorm(
        ctx2d, prepared["wo"], prepared["bo"], x2d,
        prepared["gamma"], prepared["beta"], vmem_limit=vmem_limit)
    return out2d.reshape(B, S, D)


# ----------------------------------------------------------------------------
# Pure-JAX f32 reference (same math) for correctness check.
# ----------------------------------------------------------------------------
def reference_forward(x, params, num_head):
    B, S, D = x.shape
    dh = D // num_head
    q = x.reshape(B * S, D) @ params["wq"] + params["bq"]
    k = x.reshape(B * S, D) @ params["wk"] + params["bk"]
    v = x.reshape(B * S, D) @ params["wv"] + params["bv"]
    Q = q.reshape(B * num_head, -1, dh)
    K = k.reshape(B * num_head, -1, dh)
    V = v.reshape(B * num_head, -1, dh)
    scale = float(dh) ** (-0.5)
    att = jnp.einsum("bqd,bkd->bqk", Q, K) * scale
    att = jax.nn.softmax(att, axis=-1)
    ctx = jnp.einsum("bqk,bkd->bqd", att, V)
    ctx = ctx.reshape(B, -1, dh * num_head).reshape(B * S, D)
    out = ctx @ params["wo"] + params["bo"]
    out = out + x.reshape(B * S, D)
    mean = jnp.mean(out, axis=-1, keepdims=True)
    var = jnp.mean((out - mean) ** 2, axis=-1, keepdims=True)
    out = (out - mean) * jax.lax.rsqrt(var + 1e-5)
    out = out * params["gamma"] + params["beta"]
    return out.reshape(B, S, D)


def init_params(key, dim_model):
    ks = jax.random.split(key, 4)
    scale = 0.02
    # Linear weights stored as (in, out)  (== PyTorch weight.T)
    return {
        "wq": scale * jax.random.normal(ks[0], (dim_model, dim_model), jnp.float32),
        "bq": jnp.zeros((1, dim_model), jnp.float32),
        "wk": scale * jax.random.normal(ks[1], (dim_model, dim_model), jnp.float32),
        "bk": jnp.zeros((1, dim_model), jnp.float32),
        "wv": scale * jax.random.normal(ks[2], (dim_model, dim_model), jnp.float32),
        "bv": jnp.zeros((1, dim_model), jnp.float32),
        "wo": scale * jax.random.normal(ks[3], (dim_model, dim_model), jnp.float32),
        "bo": jnp.zeros((1, dim_model), jnp.float32),
        "gamma": jnp.ones((1, dim_model), jnp.float32),   # LayerNorm weight
        "beta": jnp.zeros((1, dim_model), jnp.float32),   # LayerNorm bias
    }


if __name__ == "__main__":
    B, S, dim_model, num_head = 2, 8, 32, 4

    key = jax.random.PRNGKey(0)
    kx, kp = jax.random.split(key)
    x = jax.random.normal(kx, (B, S, dim_model), jnp.float32)
    params = init_params(kp, dim_model)

    prepared = prepare_params(params, num_head)   # one-time weight prep (hoisted)
    out = multi_head_attention_forward(x, prepared, num_head)
    out = jax.block_until_ready(out)

    ref = jax.block_until_ready(reference_forward(x, params, num_head))
    # bf16 MXU operands with f32 accumulation -> looser tolerance than pure f32.
    np.testing.assert_allclose(np.asarray(out), np.asarray(ref),
                               rtol=2e-2, atol=2e-2)

    print("KERNEL_OK")
</pallas_src>

<mosaic_0001>
module attributes {stable_mosaic.version = 11 : i64} {
  func.func @qkv_kernel(%arg0: i32, %arg1: memref<16x32xbf16, #tpu.memory_space<vmem>>, %arg2: memref<32x96xbf16, #tpu.memory_space<vmem>>, %arg3: memref<1x96xf32, #tpu.memory_space<vmem>>, %arg4: memref<16x32xbf16, #tpu.memory_space<vmem>>, %arg5: memref<16x32xbf16, #tpu.memory_space<vmem>>, %arg6: memref<16x32xbf16, #tpu.memory_space<vmem>>) attributes {dimension_semantics = [#tpu.dimension_semantics<parallel>], iteration_bounds = array<i64: 1>, scalar_prefetch = 0 : i64, scratch_operands = 0 : i64, tpu.core_type = #tpu.core_type<tc>, window_params = [{transform_indices = @transform_0, window_bounds = array<i64: 16, 32>}, {pipeline_mode = #tpu.pipeline_mode<synchronous>, transform_indices = @transform_1, window_bounds = array<i64: 32, 96>}, {pipeline_mode = #tpu.pipeline_mode<synchronous>, transform_indices = @transform_2, window_bounds = array<i64: 1, 96>}, {transform_indices = @transform_3, window_bounds = array<i64: 16, 32>}, {transform_indices = @transform_4, window_bounds = array<i64: 16, 32>}, {transform_indices = @transform_5, window_bounds = array<i64: 16, 32>}]} {
    %c0 = arith.constant 0 : index
    %c0_0 = arith.constant 0 : index
    %0 = vector.load %arg1[%c0, %c0_0] : memref<16x32xbf16, #tpu.memory_space<vmem>>, vector<16x32xbf16>
    %c0_1 = arith.constant 0 : index
    %c0_2 = arith.constant 0 : index
    %1 = vector.load %arg2[%c0_1, %c0_2] : memref<32x96xbf16, #tpu.memory_space<vmem>>, vector<32x96xbf16>
    %cst = arith.constant dense<0.000000e+00> : vector<16x96xf32>
    %2 = tpu.matmul %0, %1, %cst {dimension_numbers = #tpu.dot_dimension_numbers<[1], [0], [0], [1], [0, 0, 1, 1], [], []>} : vector<16x32xbf16>, vector<32x96xbf16>, vector<16x96xf32> -> vector<16x96xf32>
    %c0_3 = arith.constant 0 : index
    %c0_4 = arith.constant 0 : index
    %3 = vector.load %arg3[%c0_3, %c0_4] : memref<1x96xf32, #tpu.memory_space<vmem>>, vector<1x96xf32>
    %4 = vector.broadcast %3 : vector<1x96xf32> to vector<16x96xf32>
    %5 = arith.addf %2, %4 : vector<16x96xf32>
    %6 = vector.extract_strided_slice %5 {offsets = [0, 0], sizes = [16, 32], strides = [1, 1]} : vector<16x96xf32> to vector<16x32xf32>
    %7 = arith.truncf %6 : vector<16x32xf32> to vector<16x32xbf16>
    %c0_5 = arith.constant 0 : index
    %c0_6 = arith.constant 0 : index
    %8 = vector.load %arg4[%c0_5, %c0_6] : memref<16x32xbf16, #tpu.memory_space<vmem>>, vector<16x32xbf16>
    tpu.vector_store %arg4[%c0_5, %c0_6], %7 {strides = array<i32>} : memref<16x32xbf16, #tpu.memory_space<vmem>>, vector<16x32xbf16>,
    %9 = vector.extract_strided_slice %5 {offsets = [0, 32], sizes = [16, 32], strides = [1, 1]} : vector<16x96xf32> to vector<16x32xf32>
    %10 = arith.truncf %9 : vector<16x32xf32> to vector<16x32xbf16>
    %c0_7 = arith.constant 0 : index
    %c0_8 = arith.constant 0 : index
    %11 = vector.load %arg5[%c0_7, %c0_8] : memref<16x32xbf16, #tpu.memory_space<vmem>>, vector<16x32xbf16>
    tpu.vector_store %arg5[%c0_7, %c0_8], %10 {strides = array<i32>} : memref<16x32xbf16, #tpu.memory_space<vmem>>, vector<16x32xbf16>,
    %12 = vector.extract_strided_slice %5 {offsets = [0, 64], sizes = [16, 32], strides = [1, 1]} : vector<16x96xf32> to vector<16x32xf32>
    %13 = arith.truncf %12 : vector<16x32xf32> to vector<16x32xbf16>
    %c0_9 = arith.constant 0 : index
    %c0_10 = arith.constant 0 : index
    %14 = vector.load %arg6[%c0_9, %c0_10] : memref<16x32xbf16, #tpu.memory_space<vmem>>, vector<16x32xbf16>
    tpu.vector_store %arg6[%c0_9, %c0_10], %13 {strides = array<i32>} : memref<16x32xbf16, #tpu.memory_space<vmem>>, vector<16x32xbf16>,
    return
  }
  func.func @transform_0(%arg0: i32) -> (i32, i32) {
    %c0_i32 = arith.constant 0 : i32
    %c0_i32_0 = arith.constant 0 : i32
    return %arg0, %c0_i32 : i32, i32
  }
  func.func @transform_1(%arg0: i32) -> (i32, i32) {
    %c0_i32 = arith.constant 0 : i32
    %c0_i32_0 = arith.constant 0 : i32
    %c0_i32_1 = arith.constant 0 : i32
    return %c0_i32, %c0_i32_0 : i32, i32
  }
  func.func @transform_2(%arg0: i32) -> (i32, i32) {
    %c0_i32 = arith.constant 0 : i32
    %c0_i32_0 = arith.constant 0 : i32
    %c0_i32_1 = arith.constant 0 : i32
    return %c0_i32, %c0_i32_0 : i32, i32
  }
  func.func @transform_3(%arg0: i32) -> (i32, i32) {
    %c0_i32 = arith.constant 0 : i32
    %c0_i32_0 = arith.constant 0 : i32
    return %arg0, %c0_i32 : i32, i32
  }
  func.func @transform_4(%arg0: i32) -> (i32, i32) {
    %c0_i32 = arith.constant 0 : i32
    %c0_i32_0 = arith.constant 0 : i32
    return %arg0, %c0_i32 : i32, i32
  }
  func.func @transform_5(%arg0: i32) -> (i32, i32) {
    %c0_i32 = arith.constant 0 : i32
    %c0_i32_0 = arith.constant 0 : i32
    return %arg0, %c0_i32 : i32, i32
  }
}

</mosaic_0001>

<bundles_post_ra>
// kernel: tpu_custom_call.1
= control target key start
LH: loop header
LB: loop body
LE: loop exit
PB: predicated region body
PF: predicated region fallthrough
CT: control target
= control target key end

     0   :  { %11 = vsyncpa [#allocation3], 0  ;;  %s483_s0 = inlined_call_operand.hbm [shape: bf16[16,32], index: 0, kind: input, shape index: {}]   ;;  %s484_s1 = inlined_call_operand.hbm [shape: bf16[32,96], index: 1, kind: input, shape index: {}]   ;;  %s485_s2 = inlined_call_operand.vmem [shape: f32[1,96], index: 2, kind: input, shape index: {}]   ;;  %s486_s3 = inlined_call_operand.hbm [shape: bf16[16,32], index: 3, kind: output, shape index: {0}]   ;;  %s487_s4 = inlined_call_operand.hbm [shape: bf16[16,32], index: 4, kind: output, shape index: {1}]   ;;  %s488_s5 = inlined_call_operand.hbm [shape: bf16[16,32], index: 5, kind: output, shape index: {2}]  }
   0x1   :  { %12 = vsyncpa [#allocation6], 0 }
   0x2   :  { %13 = vsyncpa [#allocation4], 0 }
   0x3   :  { %14 = vsyncpa [#allocation9], 0  ;;  %s350_s18 = smov [#allocation2]   ;;  %s232_s22 = scalar_lea.hbm %s483_s0, 128 }
   0x4   :  { %s20_s19 = sshll.u32 %s350_s18, 4  ;;  %p233_p0 = scmp.ne.s32.totalorder %s483_s0, %s232_s22  ;;  %s21_s19 = int_to_ptr.vmem [resolvable:$true] %s20_s19 }
   0x5   :  { %p236_p1 = scmp.lt.u32.totalorder %s232_s22, %s483_s0 }
   0x7   :  { %p238_p2 = pnand %p236_p1, %p233_p0 }
   0x9   :  { %241 = shalt.err (!%p238_p2)
}
   0xa   :  { %s242_s27 = scalar_lea.vmem %s21_s19, 128  ;;  %p247_p4 = scmp.lt.s32.totalorder %s21_s19, %s21_s19 }
   0xb   :  { %p243_p3 = scmp.ne.s32.totalorder %s21_s19, %s242_s27  ;;  %p248_p5 = scmp.lt.s32.totalorder %s242_s27, %s242_s27 }
   0xd   :  { %p249_p6 = por %p248_p5, %p247_p4 }
   0xf   :  { %p250_p7 = pnand %p249_p6, %p243_p3 }
  0x11   :  { %253 = shalt.err (!%p250_p7)
}
  0x12   :  { %s351_s28 = smov 64   ;;  %s352_s29 = smov 4  }
  0x13   :  { %26 = dma.hbm_to_vmem [thread:$0]  %s483_s0, 128, %s21_s19, [#allocation3], %s351_s28, %s351_s28, %s352_s29  }
  0x14   :  { %s353_s7 = smov [#allocation5]   ;;  %s254_s11 = scalar_lea.hbm %s484_s1, 256 }
  0x15   :  { %s32_s8 = sshll.u32 %s353_s7, 4  ;;  %p255_p8 = scmp.ne.s32.totalorder %s484_s1, %s254_s11  ;;  %s33_s8 = int_to_ptr.vmem [resolvable:$true] %s32_s8 }
  0x16   :  { %p258_p9 = scmp.lt.u32.totalorder %s254_s11, %s484_s1 }
  0x18   :  { %p260_p10 = pnand %p258_p9, %p255_p8 }
  0x1a   :  { %263 = shalt.err (!%p260_p10)
}
  0x1b   :  { %s264_s16 = scalar_lea.vmem %s33_s8, 256  ;;  %p269_p12 = scmp.lt.s32.totalorder %s33_s8, %s33_s8 }
  0x1c   :  { %p265_p11 = scmp.ne.s32.totalorder %s33_s8, %s264_s16  ;;  %p270_p13 = scmp.lt.s32.totalorder %s264_s16, %s264_s16 }
  0x1e   :  { %p271_p0 = por %p270_p13, %p269_p12 }
  0x20   :  { %p272_p1 = pnand %p271_p0, %p265_p11 }
  0x22   :  { %275 = shalt.err (!%p272_p1)
}
  0x23   :  { %38 = dma.hbm_to_vmem [thread:$0]  %s484_s1, 256, %s33_s8, [#allocation6], %s351_s28, %s351_s28, %s352_s29  }
  0x24   :  { %342 = dma.done.wait [#allocation3], 128  }
  0x25   :  { %343 = vsyncadd [#allocation3], 4294967168 }
  0x26   :  { %344 = dma.done.wait [#allocation6], 256  }
  0x27   :  { %345 = vsyncadd [#allocation6], 4294967040  ;;  %v354_v0 = vmov 0.0   ;;  %vm355_vm0 = vmmov 0   ;;  %v229_v1 = vld [vmem:[#allocation5] sm:$0xff]   ;;  %v230_v2 = vld [vmem:[#allocation5 + $0x8] sm:$0xff]  }
  0x28   :  { %211 = vmatprep.subr.bf16.mxu0 %v354_v0  ;;  %215 = vmatprep.mubr.msk.bf16.mxu0 %vm355_vm0, %v354_v0  ;;  %v231_v3 = vld [vmem:[#allocation2] sm:$0xff]   ;;  %vm78_vm1 = vcmask 261120   ;;  %vm131_vm2 = vcmask 257024   ;;  %s356_s1 = smov [#allocation7]   ;;  %s357_s21 = smov 96  }
  0x29   :  { %212 = vmatpush3.bf16.msra.mxu0 %v229_v1  ;;  %v199_v4 = vld [vmem:[%s485_s2] ss:$0 sm:$0xff]  ;;  %s155_s20 = sshll.u32 %s356_s1, 4  ;;  %s156_s20 = int_to_ptr.vmem [resolvable:$true] %s155_s20 }
  0x2a   :  { %213 = vmatprep.subr.bf16.mxu0 %v354_v0  ;;  %s276_s2 = scalar_lea.vmem %s156_s20, 128  ;;  %p281_p3 = scmp.lt.s32.totalorder %s156_s20, %s156_s20 }
  0x2b   :  { %p277_p2 = scmp.ne.s32.totalorder %s156_s20, %s276_s2  ;;  %p282_p4 = scmp.lt.s32.totalorder %s276_s2, %s276_s2 }
  0x2d   :  { %214 = vmatpush3.bf16.msra.mxu0 %v230_v2  ;;  %p283_p5 = por %p282_p4, %p281_p3 }
  0x2f   :  { %p284_p6 = pnand %p283_p5, %p277_p2 }
  0x30   :  { %216 = vmatmul.mubr.msk.bf16.vlgmr.msra.gmra.mrb[0].mxu0 %vm78_vm1, %v231_v3 }
 0x103   :  { %v116_v5 = vpop.f32.mrb[0].mxu0 }
 0x104   :  { %v117_v6 = vadd.f32 %v199_v4, %v116_v5  ;;  %v217_v7 = vpop.f32.mrb[1].mxu0 }
 0x105   :  { %v119_v8 = vpop.f32.mrb[2].mxu0 }
 0x106   :  { %v206_v9 = vpack.c.bf16 %v117_v6, %v117_v6  ;;  %v120_v10 = vadd.f32 %v199_v4, %v119_v8  ;;  %v218_v11 = vpop.f32.mrb[3].mxu0 }
 0x108   :  { %v207_v12 = vpack.c.bf16 %v120_v10, %v120_v10  ;;  %142 = vrot.lane.b32.xlu1 %v206_v9, %s351_s28  ;;  %134 = vrot.lane.b32.xlu0 %v206_v9, %s357_s21  ;;  %132 = vst.msk [vmem:[#allocation7] sm:$0xf] %vm131_vm2, %v206_v9 }
 0x10a   :  { %133 = vst.msk [vmem:[#allocation7 + $0x4] sm:$0xf] %vm131_vm2, %v207_v12 }
 0x10b   :  { %287 = shalt.err (!%p284_p6)
}
 0x10c   :  { %s288_s24 = scalar_lea.hbm %s486_s3, 128 }
 0x10d   :  { %p289_p7 = scmp.ne.s32.totalorder %s486_s3, %s288_s24  ;;  %p292_p8 = scmp.lt.u32.totalorder %s288_s24, %s486_s3 }
 0x10f   :  { %p294_p9 = pnand %p292_p8, %p289_p7 }
 0x111   :  { %297 = shalt.err (!%p294_p9)
}
 0x112   :  { %161 = dma.vmem_to_hbm [thread:$0]  %s156_s20, 128, %s486_s3, [#allocation4], %s351_s28, %s351_s28, %s352_s29  }
 0x113   :  { %144 = vrot.lane.b32.xlu1 %v207_v12, %s351_s28  ;;  %136 = vrot.lane.b32.xlu0 %v207_v12, %s357_s21  ;;  %s358_s8 = smov [#allocation8]   ;;  %s359_s10 = smov [#allocation10]  }
 0x114   :  { %s167_s9 = sshll.u32 %s358_s8, 4  ;;  %s179_s11 = sshll.u32 %s359_s10, 4  ;;  %s168_s9 = int_to_ptr.vmem [resolvable:$true] %s167_s9  ;;  %s444_s11 = int_to_ptr.vmem [resolvable:$true] %s179_s11 }
 0x115   :  { %s298_s3 = scalar_lea.vmem %s168_s9, 128  ;;  %p303_p11 = scmp.lt.s32.totalorder %s168_s9, %s168_s9 }
 0x116   :  { %p299_p10 = scmp.ne.s32.totalorder %s168_s9, %s298_s3  ;;  %p304_p12 = scmp.lt.s32.totalorder %s298_s3, %s298_s3 }
 0x118   :  { %p305_p13 = por %p304_p12, %p303_p11 }
 0x11a   :  { %p306_p0 = pnand %p305_p13, %p299_p10 }
 0x17a   :  { %v143_v13 = vpop.permute.xlu1 %142  ;;  %v135_v14 = vpop.permute.xlu0 %134 }
 0x17b   :  { %148 = vst.msk [vmem:[#allocation10] sm:$0xf] %vm131_vm2, %v143_v13  ;;  %140 = vst.msk [vmem:[#allocation8] sm:$0xf] %vm131_vm2, %v135_v14 }
 0x185   :  { %v145_v15 = vpop.permute.xlu1 %144  ;;  %v137_v16 = vpop.permute.xlu0 %136 }
 0x186   :  { %149 = vst.msk [vmem:[#allocation10 + $0x4] sm:$0xf] %vm131_vm2, %v145_v15  ;;  %141 = vst.msk [vmem:[#allocation8 + $0x4] sm:$0xf] %vm131_vm2, %v137_v16 }
 0x187   :  { %309 = shalt.err (!%p306_p0)
}
 0x188   :  { %s310_s14 = scalar_lea.hbm %s487_s4, 128 }
 0x189   :  { %p311_p1 = scmp.ne.s32.totalorder %s487_s4, %s310_s14  ;;  %p314_p2 = scmp.lt.u32.totalorder %s310_s14, %s487_s4 }
 0x18b   :  { %p316_p3 = pnand %p314_p2, %p311_p1 }
 0x18d   :  { %319 = shalt.err (!%p316_p3)
}
 0x18e   :  { %173 = dma.vmem_to_hbm [thread:$0]  %s168_s9, 128, %s487_s4, [#allocation9], %s351_s28, %s351_s28, %s352_s29  }
 0x18f   :  { %s320_s1 = scalar_lea.vmem %s444_s11, 128  ;;  %p325_p5 = scmp.lt.s32.totalorder %s444_s11, %s444_s11 }
 0x190   :  { %p321_p4 = scmp.ne.s32.totalorder %s444_s11, %s320_s1  ;;  %p326_p6 = scmp.lt.s32.totalorder %s320_s1, %s320_s1 }
 0x192   :  { %p327_p7 = por %p326_p6, %p325_p5 }
 0x194   :  { %p328_p8 = pnand %p327_p7, %p321_p4 }
 0x196   :  { %331 = shalt.err (!%p328_p8)
}
 0x197   :  { %s332_s2 = scalar_lea.hbm %s488_s5, 128 }
 0x198   :  { %p333_p9 = scmp.ne.s32.totalorder %s488_s5, %s332_s2  ;;  %p336_p10 = scmp.lt.u32.totalorder %s332_s2, %s488_s5 }
 0x19a   :  { %p338_p11 = pnand %p336_p10, %p333_p9 }
 0x19c   :  { %341 = shalt.err (!%p338_p11)
}
 0x19d   :  { %185 = dma.vmem_to_hbm [thread:$0]  %s444_s11, 128, %s488_s5, [#allocation9], %s351_s28, %s351_s28, %s352_s29  }
 0x19e   :  { %346 = dma.done.wait [#allocation4], 128  }
 0x19f   :  { %347 = vsyncadd [#allocation4], 4294967168 }
 0x1a0   :  { %348 = dma.done.wait [#allocation9], 256  }
 0x1a1   :  { %349 = vsyncadd [#allocation9], 4294967040 }
 0x1a2   :  { %195 = vsyncpa [#allocation3], 1 }
 0x1a3   :  { %196 = vsyncpa [#allocation6], 1 }
 0x1a4   :  { %197 = vsyncpa [#allocation4], 1 }
 0x1a5   :  { %198 = vsyncpa [#allocation9], 1 }

</bundles_post_ra>
